<compile_context>
chip_gen: v7x
topology: tpu7x:2x2x1
jax: 0.10.0
libtpu: 0.0.40
codegen_flags: <defaults>
</compile_context>

<pallas_src>
import functools

import jax
import jax.numpy as jnp
from jax.experimental import pallas as pl
from jax.experimental.pallas import tpu as pltpu

LANE = 128     # TPU lane width (last-dim tile)
SUBLANE = 8    # f32 sublane tile


def _round_up(n, m):
    return ((n + m - 1) // m) * m


def _merge_cls_dec_default():
    # 256-wide block-diagonal merge helps the 2x256^2 MXUs (v6e/v7x); on the
    # 4x128^2 v5e/v5p MXU keep two separate 128-wide matmuls instead.
    try:
        kind = jax.devices()[0].device_kind.lower()
    except Exception:
        return True
    return "v5" not in kind


# ----------------------------- Fused Pallas kernel ---------------------------

def _vae_fused_kernel(xe_ref, w_sq_ref, b_sq_ref, w_mv_ref, b_mv_ref,
                      w_cd_ref, b_cd_ref, out_ref, *, n_enc, n_dec, merge_cd):
    """Whole VanillaVAE forward for one (TB, .) batch tile.

    xe_ref  : [TB, 256]  f32   lanes 0:128 = padded x, 128:256 = padded eps
    w_sq_ref: [n_sq,128,128] bf16  stacked square layers: enc*, cls2, dec[1:], final
    b_sq_ref: [n_sq,1,128]   f32
    w_mv_ref: [128, 256] bf16  merged fc_mu (cols 0:128) / fc_var (cols 128:256)
    w_cd_ref: [256, 256] bf16  block-diag: cls1 (rows/cols 0:128), dec0 (128:256)
    out_ref : [TB, 640]  f32   packed [z | recon | logits | mu | log_var]
    """

    def dense(h_bf16, w, b, relu):
        # bf16 MXU operands, f32 accumulation, f32 bias/ReLU epilogue.
        y = jnp.dot(h_bf16, w, preferred_element_type=jnp.float32)
        y = y + b
        if relu:
            y = jnp.maximum(y, 0.0)
        return y

    # --- encoder stack (Linear + ReLU) ---
    layer = 0
    h = xe_ref[:, :LANE].astype(jnp.bfloat16)
    eps = xe_ref[:, LANE:]
    for _ in range(n_enc):
        h = dense(h, w_sq_ref[layer], b_sq_ref[layer], relu=True)
        h = h.astype(jnp.bfloat16)
        layer += 1

    # --- merged fc_mu / fc_var: one [TB,128] @ [128,256] MXU pass ---
    mv = dense(h, w_mv_ref[...], b_mv_ref[...], relu=False)
    mu, log_var = mv[:, :LANE], mv[:, LANE:]

    # --- reparameterize (padded lanes: mu = log_var = eps = 0 -> z = 0) ---
    z = mu + eps * jnp.exp(0.5 * log_var)

    # --- classifier-1 (on mu) and decoder-0 (on z) ---
    if merge_cd:
        # one 256-wide block-diagonal MXU pass (v6e / v7x)
        lhs = jnp.concatenate([mu, z], axis=-1).astype(jnp.bfloat16)
        cd = dense(lhs, w_cd_ref[...], b_cd_ref[...], relu=True)
        c = cd[:, :LANE].astype(jnp.bfloat16)
        d = cd[:, LANE:].astype(jnp.bfloat16)
    else:
        # two 128-wide passes (v5e)
        c = dense(mu.astype(jnp.bfloat16), w_cd_ref[:LANE, :LANE],
                  b_cd_ref[:, :LANE], relu=True).astype(jnp.bfloat16)
        d = dense(z.astype(jnp.bfloat16), w_cd_ref[LANE:, LANE:],
                  b_cd_ref[:, LANE:], relu=True).astype(jnp.bfloat16)

    # --- classifier-2 ---
    logits = dense(c, w_sq_ref[layer], b_sq_ref[layer], relu=False)
    layer += 1

    # --- remaining decoder layers + final layer ---
    for _ in range(n_dec - 1):
        d = dense(d, w_sq_ref[layer], b_sq_ref[layer], relu=True)
        d = d.astype(jnp.bfloat16)
        layer += 1
    recon = dense(d, w_sq_ref[layer], b_sq_ref[layer], relu=False)

    # --- single lane-dense output slab (640 = 5*128 -> unmasked stores) ---
    out_ref[...] = jnp.concatenate([z, recon, logits, mu, log_var], axis=-1)


def _vae_fused_call(xe, packed, n_enc, n_dec, merge_cd, tb):
    Bp = xe.shape[0]
    w_sq, b_sq, w_mv, b_mv, w_cd, b_cd = packed
    n_sq = w_sq.shape[0]
    kernel = functools.partial(_vae_fused_kernel, n_enc=n_enc, n_dec=n_dec,
                               merge_cd=merge_cd)

    def resident(shape):
        # full-array block with constant index_map -> loaded once, VMEM-resident
        return pl.BlockSpec(shape, lambda i: (0,) * len(shape))

    return pl.pallas_call(
        kernel,
        out_shape=jax.ShapeDtypeStruct((Bp, 5 * LANE), jnp.float32),
        grid=(Bp // tb,),
        in_specs=[
            pl.BlockSpec((tb, 2 * LANE), lambda i: (i, 0)),      # packed x|eps
            resident((n_sq, LANE, LANE)),                        # weight stack
            resident((n_sq, 1, LANE)),                           # bias stack
            resident((LANE, 2 * LANE)),                          # merged mu/var W
            resident((1, 2 * LANE)),                             # merged mu/var b
            resident((2 * LANE, 2 * LANE)),                      # block-diag cls1|dec0 W
            resident((1, 2 * LANE)),                             # block-diag cls1|dec0 b
        ],
        out_specs=pl.BlockSpec((tb, 5 * LANE), lambda i: (i, 0)),
        compiler_params=pltpu.CompilerParams(
            dimension_semantics=("parallel",)),
    )(xe, w_sq, b_sq, w_mv, b_mv, w_cd, b_cd)


# ----------------------------- Parameter init --------------------------------

def _init_linear_raw(key, din, dout):
    kw, kb = jax.random.split(key)
    bound = 1.0 / float(din) ** 0.5
    w = jax.random.uniform(kw, (din, dout), jnp.float32, -bound, bound)
    b = jax.random.uniform(kb, (dout,), jnp.float32, -bound, bound)
    return w, b


def _pad_w(w):
    out = jnp.zeros((LANE, LANE), jnp.bfloat16)
    return out.at[: w.shape[0], : w.shape[1]].set(w.astype(jnp.bfloat16))


def _pad_b(b):
    out = jnp.zeros((1, LANE), jnp.float32)
    return out.at[0, : b.shape[0]].set(b)


def init_vanilla_vae_params(key, input_dim, latent_dim, hidden_dims):
    hidden_dims = list(hidden_dims)
    assert max([input_dim, latent_dim, 128] + hidden_dims) <= LANE, (
        "single-lane-block layout requires all dims <= 128")

    n_enc = n_dec = len(hidden_dims)
    keys = jax.random.split(key, n_enc + n_dec + 5)   # exactly enough keys
    k = iter(keys)

    # raw (unpadded) torch-style layers
    enc, last = [], input_dim
    for hdim in hidden_dims:
        enc.append(_init_linear_raw(next(k), last, hdim))
        last = hdim
    w_mu, b_mu = _init_linear_raw(next(k), last, latent_dim)
    w_var, b_var = _init_linear_raw(next(k), last, latent_dim)
    w_c1, b_c1 = _init_linear_raw(next(k), latent_dim, 128)
    w_c2, b_c2 = _init_linear_raw(next(k), 128, 2)
    rev = list(reversed(hidden_dims))
    dec, last = [], latent_dim
    for hdim in rev:
        dec.append(_init_linear_raw(next(k), last, hdim))
        last = hdim
    w_fin, b_fin = _init_linear_raw(next(k), rev[-1], input_dim)

    # --- packed kernel layout ---
    # square stack order must match kernel: enc[0..n-1], cls2, dec[1..n-1], final
    sq = list(enc) + [(w_c2, b_c2)] + list(dec[1:]) + [(w_fin, b_fin)]
    w_sq = jnp.stack([_pad_w(w) for w, _ in sq])            # [n_sq,128,128] bf16
    b_sq = jnp.stack([_pad_b(b) for _, b in sq])             # [n_sq,1,128]  f32

    # merged fc_mu / fc_var
    w_mv = jnp.zeros((LANE, 2 * LANE), jnp.bfloat16)
    w_mv = w_mv.at[: w_mu.shape[0], :latent_dim].set(w_mu.astype(jnp.bfloat16))
    w_mv = w_mv.at[: w_var.shape[0], LANE:LANE + latent_dim].set(
        w_var.astype(jnp.bfloat16))
    b_mv = jnp.zeros((1, 2 * LANE), jnp.float32)
    b_mv = b_mv.at[0, :latent_dim].set(b_mu).at[0, LANE:LANE + latent_dim].set(b_var)

    # block-diagonal classifier-1 (on mu) + decoder-0 (on z)
    w_d0, b_d0 = dec[0]
    w_cd = jnp.zeros((2 * LANE, 2 * LANE), jnp.bfloat16)
    w_cd = w_cd.at[: w_c1.shape[0], : w_c1.shape[1]].set(w_c1.astype(jnp.bfloat16))
    w_cd = w_cd.at[LANE:LANE + w_d0.shape[0], LANE:LANE + w_d0.shape[1]].set(
        w_d0.astype(jnp.bfloat16))
    b_cd = jnp.zeros((1, 2 * LANE), jnp.float32)
    b_cd = b_cd.at[0, : b_c1.shape[0]].set(b_c1)
    b_cd = b_cd.at[0, LANE:LANE + b_d0.shape[0]].set(b_d0)

    return {
        "packed": (w_sq, b_sq, w_mv, b_mv, w_cd, b_cd),
        "dims": {"input_dim": input_dim, "latent_dim": latent_dim,
                 "n_enc": n_enc, "n_dec": n_dec},
    }


# ----------------------------- Forward ---------------------------------------

def vanilla_vae_forward(params, x, eps, *, batch_tile=256, merge_cd=None):
    dims = params["dims"]
    B, din = x.shape
    L = dims["latent_dim"]
    if merge_cd is None:
        merge_cd = _merge_cls_dec_default()

    # batch tile: 256 rows when the batch is big (fills the MXU + pipelines),
    # otherwise just round the batch up to a sublane multiple.
    tb = batch_tile if B >= batch_tile else _round_up(max(B, 1), SUBLANE)
    Bp = _round_up(B, tb)

    # single packed lane-dense input slab: [x | eps]
    # TODO(synk): eps could instead be drawn in-kernel via pltpu.prng_seed /
    # pltpu.stateful_normal; kept as an explicit input for determinism.
    xe = jnp.zeros((Bp, 2 * LANE), jnp.float32)
    xe = xe.at[:B, :din].set(x).at[:B, LANE:LANE + L].set(eps)

    out = _vae_fused_call(xe, params["packed"], dims["n_enc"], dims["n_dec"],
                          merge_cd, tb)

    # slice the packed [z | recon | logits | mu | log_var] slab back to real shapes
    z = out[:B, 0 * LANE:0 * LANE + L]
    recon = out[:B, 1 * LANE:1 * LANE + din]
    logits = out[:B, 2 * LANE:2 * LANE + 2]
    mu = out[:B, 3 * LANE:3 * LANE + L]
    log_var = out[:B, 4 * LANE:4 * LANE + L]
    return z, recon, logits, mu, log_var


# ----------------------------- Pure-JAX reference ----------------------------

def _reference_forward(params, x, eps):
    """Plain-JAX mirror of the fused kernel (same packed bf16 weights)."""
    w_sq, b_sq, w_mv, b_mv, w_cd, b_cd = params["packed"]
    dims = params["dims"]
    B, din = x.shape
    L = dims["latent_dim"]
    n_enc, n_dec = dims["n_enc"], dims["n_dec"]

    def dense(h, w, b, relu):
        y = jnp.dot(h.astype(jnp.bfloat16), w.astype(jnp.bfloat16),
                    preferred_element_type=jnp.float32) + b
        return jnp.maximum(y, 0.0) if relu else y

    h = jnp.zeros((B, LANE), jnp.float32).at[:, :din].set(x)
    e = jnp.zeros((B, LANE), jnp.float32).at[:, :L].set(eps)
    layer = 0
    for _ in range(n_enc):
        h = dense(h, w_sq[layer], b_sq[layer, 0], True)
        layer += 1
    mv = dense(h, w_mv, b_mv[0], False)
    mu, log_var = mv[:, :LANE], mv[:, LANE:]
    z = mu + e * jnp.exp(0.5 * log_var)
    c = dense(mu, w_cd[:LANE, :LANE], b_cd[0, :LANE], True)
    d = dense(z, w_cd[LANE:, LANE:], b_cd[0, LANE:], True)
    logits = dense(c, w_sq[layer], b_sq[layer, 0], False)
    layer += 1
    for _ in range(n_dec - 1):
        d = dense(d, w_sq[layer], b_sq[layer, 0], True)
        layer += 1
    recon = dense(d, w_sq[layer], b_sq[layer, 0], False)
    return (z[:, :L], recon[:, :din], logits[:, :2], mu[:, :L], log_var[:, :L])


# ----------------------------- Main -------------------------------------------

if __name__ == "__main__":
    batch = 2
    input_dim = 32
    latent_dim = 8
    hidden_dims = [64, 32, 16]

    key = jax.random.PRNGKey(0)
    k_param, k_x, k_eps = jax.random.split(key, 3)

    params = init_vanilla_vae_params(k_param, input_dim, latent_dim, hidden_dims)
    x = jax.random.normal(k_x, (batch, input_dim), jnp.float32)
    eps = jax.random.normal(k_eps, (batch, latent_dim), jnp.float32)  # randn_like(std)

    outs = vanilla_vae_forward(params, x, eps)
    jax.block_until_ready(outs)
    z, recon, class_logits, mu, log_var = outs

    assert z.shape == (batch, latent_dim)
    assert recon.shape == (batch, input_dim)
    assert class_logits.shape == (batch, 2)
    assert mu.shape == (batch, latent_dim)
    assert log_var.shape == (batch, latent_dim)

    ref = _reference_forward(params, x, eps)
    for got, want in zip(outs, ref):
        assert bool(jnp.all(jnp.isfinite(got)))
        assert bool(jnp.allclose(got, want, atol=2e-2, rtol=2e-2)), "mismatch vs reference"

    print("KERNEL_OK")
</pallas_src>

<mosaic_0001>
module attributes {stable_mosaic.version = 11 : i64} {
  func.func @_vae_fused_kernel(%arg0: i32, %arg1: memref<8x256xf32, #tpu.memory_space<vmem>>, %arg2: memref<7x128x128xbf16, #tpu.memory_space<vmem>>, %arg3: memref<7x1x128xf32, #tpu.memory_space<vmem>>, %arg4: memref<128x256xbf16, #tpu.memory_space<vmem>>, %arg5: memref<1x256xf32, #tpu.memory_space<vmem>>, %arg6: memref<256x256xbf16, #tpu.memory_space<vmem>>, %arg7: memref<1x256xf32, #tpu.memory_space<vmem>>, %arg8: memref<8x640xf32, #tpu.memory_space<vmem>>) attributes {dimension_semantics = [#tpu.dimension_semantics<parallel>], iteration_bounds = array<i64: 1>, scalar_prefetch = 0 : i64, scratch_operands = 0 : i64, tpu.core_type = #tpu.core_type<tc>, window_params = [{transform_indices = @transform_0, window_bounds = array<i64: 8, 256>}, {pipeline_mode = #tpu.pipeline_mode<synchronous>, transform_indices = @transform_1, window_bounds = array<i64: 7, 128, 128>}, {pipeline_mode = #tpu.pipeline_mode<synchronous>, transform_indices = @transform_2, window_bounds = array<i64: 7, 1, 128>}, {pipeline_mode = #tpu.pipeline_mode<synchronous>, transform_indices = @transform_3, window_bounds = array<i64: 128, 256>}, {pipeline_mode = #tpu.pipeline_mode<synchronous>, transform_indices = @transform_4, window_bounds = array<i64: 1, 256>}, {pipeline_mode = #tpu.pipeline_mode<synchronous>, transform_indices = @transform_5, window_bounds = array<i64: 256, 256>}, {pipeline_mode = #tpu.pipeline_mode<synchronous>, transform_indices = @transform_6, window_bounds = array<i64: 1, 256>}, {transform_indices = @transform_7, window_bounds = array<i64: 8, 640>}]} {
    %c0 = arith.constant 0 : index
    %c0_0 = arith.constant 0 : index
    %0 = vector.load %arg1[%c0, %c0_0] : memref<8x256xf32, #tpu.memory_space<vmem>>, vector<8x128xf32>
    %1 = arith.truncf %0 : vector<8x128xf32> to vector<8x128xbf16>
    %c0_1 = arith.constant 0 : index
    %c128 = arith.constant 128 : index
    %2 = vector.load %arg1[%c0_1, %c128] : memref<8x256xf32, #tpu.memory_space<vmem>>, vector<8x128xf32>
    %c0_2 = arith.constant 0 : index
    %c0_3 = arith.constant 0 : index
    %c0_4 = arith.constant 0 : index
    %3 = vector.load %arg2[%c0_2, %c0_3, %c0_4] : memref<7x128x128xbf16, #tpu.memory_space<vmem>>, vector<1x128x128xbf16>
    %4 = vector.shape_cast %3 : vector<1x128x128xbf16> to vector<128x128xbf16>
    %c0_5 = arith.constant 0 : index
    %c0_6 = arith.constant 0 : index
    %c0_7 = arith.constant 0 : index
    %5 = vector.load %arg3[%c0_5, %c0_6, %c0_7] : memref<7x1x128xf32, #tpu.memory_space<vmem>>, vector<1x1x128xf32>
    %6 = vector.shape_cast %5 : vector<1x1x128xf32> to vector<1x128xf32>
    %cst = arith.constant dense<0.000000e+00> : vector<8x128xf32>
    %7 = tpu.matmul %1, %4, %cst {dimension_numbers = #tpu.dot_dimension_numbers<[1], [0], [0], [1], [0, 0, 1, 1], [], []>} : vector<8x128xbf16>, vector<128x128xbf16>, vector<8x128xf32> -> vector<8x128xf32>
    %8 = vector.broadcast %6 : vector<1x128xf32> to vector<8x128xf32>
    %9 = arith.addf %7, %8 : vector<8x128xf32>
    %cst_8 = arith.constant 0.000000e+00 : f32
    %10 = vector.broadcast %cst_8 : f32 to vector<8x128xf32>
    %11 = arith.maximumf %9, %10 : vector<8x128xf32>
    %12 = arith.truncf %11 : vector<8x128xf32> to vector<8x128xbf16>
    %c1 = arith.constant 1 : index
    %c0_9 = arith.constant 0 : index
    %c0_10 = arith.constant 0 : index
    %13 = vector.load %arg2[%c1, %c0_9, %c0_10] : memref<7x128x128xbf16, #tpu.memory_space<vmem>>, vector<1x128x128xbf16>
    %14 = vector.shape_cast %13 : vector<1x128x128xbf16> to vector<128x128xbf16>
    %c1_11 = arith.constant 1 : index
    %c0_12 = arith.constant 0 : index
    %c0_13 = arith.constant 0 : index
    %15 = vector.load %arg3[%c1_11, %c0_12, %c0_13] : memref<7x1x128xf32, #tpu.memory_space<vmem>>, vector<1x1x128xf32>
    %16 = vector.shape_cast %15 : vector<1x1x128xf32> to vector<1x128xf32>
    %cst_14 = arith.constant dense<0.000000e+00> : vector<8x128xf32>
    %17 = tpu.matmul %12, %14, %cst_14 {dimension_numbers = #tpu.dot_dimension_numbers<[1], [0], [0], [1], [0, 0, 1, 1], [], []>} : vector<8x128xbf16>, vector<128x128xbf16>, vector<8x128xf32> -> vector<8x128xf32>
    %18 = vector.broadcast %16 : vector<1x128xf32> to vector<8x128xf32>
    %19 = arith.addf %17, %18 : vector<8x128xf32>
    %cst_15 = arith.constant 0.000000e+00 : f32
    %20 = vector.broadcast %cst_15 : f32 to vector<8x128xf32>
    %21 = arith.maximumf %19, %20 : vector<8x128xf32>
    %22 = arith.truncf %21 : vector<8x128xf32> to vector<8x128xbf16>
    %c2 = arith.constant 2 : index
    %c0_16 = arith.constant 0 : index
    %c0_17 = arith.constant 0 : index
    %23 = vector.load %arg2[%c2, %c0_16, %c0_17] : memref<7x128x128xbf16, #tpu.memory_space<vmem>>, vector<1x128x128xbf16>
    %24 = vector.shape_cast %23 : vector<1x128x128xbf16> to vector<128x128xbf16>
    %c2_18 = arith.constant 2 : index
    %c0_19 = arith.constant 0 : index
    %c0_20 = arith.constant 0 : index
    %25 = vector.load %arg3[%c2_18, %c0_19, %c0_20] : memref<7x1x128xf32, #tpu.memory_space<vmem>>, vector<1x1x128xf32>
    %26 = vector.shape_cast %25 : vector<1x1x128xf32> to vector<1x128xf32>
    %cst_21 = arith.constant dense<0.000000e+00> : vector<8x128xf32>
    %27 = tpu.matmul %22, %24, %cst_21 {dimension_numbers = #tpu.dot_dimension_numbers<[1], [0], [0], [1], [0, 0, 1, 1], [], []>} : vector<8x128xbf16>, vector<128x128xbf16>, vector<8x128xf32> -> vector<8x128xf32>
    %28 = vector.broadcast %26 : vector<1x128xf32> to vector<8x128xf32>
    %29 = arith.addf %27, %28 : vector<8x128xf32>
    %cst_22 = arith.constant 0.000000e+00 : f32
    %30 = vector.broadcast %cst_22 : f32 to vector<8x128xf32>
    %31 = arith.maximumf %29, %30 : vector<8x128xf32>
    %32 = arith.truncf %31 : vector<8x128xf32> to vector<8x128xbf16>
    %c0_23 = arith.constant 0 : index
    %c0_24 = arith.constant 0 : index
    %33 = vector.load %arg4[%c0_23, %c0_24] : memref<128x256xbf16, #tpu.memory_space<vmem>>, vector<128x256xbf16>
    %c0_25 = arith.constant 0 : index
    %c0_26 = arith.constant 0 : index
    %34 = vector.load %arg5[%c0_25, %c0_26] : memref<1x256xf32, #tpu.memory_space<vmem>>, vector<1x256xf32>
    %cst_27 = arith.constant dense<0.000000e+00> : vector<8x256xf32>
    %35 = tpu.matmul %32, %33, %cst_27 {dimension_numbers = #tpu.dot_dimension_numbers<[1], [0], [0], [1], [0, 0, 1, 1], [], []>} : vector<8x128xbf16>, vector<128x256xbf16>, vector<8x256xf32> -> vector<8x256xf32>
    %36 = vector.broadcast %34 : vector<1x256xf32> to vector<8x256xf32>
    %37 = arith.addf %35, %36 : vector<8x256xf32>
    %38 = vector.extract_strided_slice %37 {offsets = [0, 0], sizes = [8, 128], strides = [1, 1]} : vector<8x256xf32> to vector<8x128xf32>
    %39 = vector.extract_strided_slice %37 {offsets = [0, 128], sizes = [8, 128], strides = [1, 1]} : vector<8x256xf32> to vector<8x128xf32>
    %cst_28 = arith.constant 5.000000e-01 : f32
    %40 = vector.broadcast %cst_28 : f32 to vector<8x128xf32>
    %41 = arith.mulf %40, %39 : vector<8x128xf32>
    %42 = math.exp %41 : vector<8x128xf32>
    %43 = arith.mulf %2, %42 : vector<8x128xf32>
    %44 = arith.addf %38, %43 : vector<8x128xf32>
    %45 = tpu.concatenate %38, %44 in 1 : vector<8x128xf32>, vector<8x128xf32> -> vector<8x256xf32>
    %46 = arith.truncf %45 : vector<8x256xf32> to vector<8x256xbf16>
    %c0_29 = arith.constant 0 : index
    %c0_30 = arith.constant 0 : index
    %47 = vector.load %arg6[%c0_29, %c0_30] : memref<256x256xbf16, #tpu.memory_space<vmem>>, vector<256x256xbf16>
    %c0_31 = arith.constant 0 : index
    %c0_32 = arith.constant 0 : index
    %48 = vector.load %arg7[%c0_31, %c0_32] : memref<1x256xf32, #tpu.memory_space<vmem>>, vector<1x256xf32>
    %cst_33 = arith.constant dense<0.000000e+00> : vector<8x256xf32>
    %49 = tpu.matmul %46, %47, %cst_33 {dimension_numbers = #tpu.dot_dimension_numbers<[1], [0], [0], [1], [0, 0, 1, 1], [], []>} : vector<8x256xbf16>, vector<256x256xbf16>, vector<8x256xf32> -> vector<8x256xf32>
    %50 = vector.broadcast %48 : vector<1x256xf32> to vector<8x256xf32>
    %51 = arith.addf %49, %50 : vector<8x256xf32>
    %cst_34 = arith.constant 0.000000e+00 : f32
    %52 = vector.broadcast %cst_34 : f32 to vector<8x256xf32>
    %53 = arith.maximumf %51, %52 : vector<8x256xf32>
    %54 = vector.extract_strided_slice %53 {offsets = [0, 0], sizes = [8, 128], strides = [1, 1]} : vector<8x256xf32> to vector<8x128xf32>
    %55 = arith.truncf %54 : vector<8x128xf32> to vector<8x128xbf16>
    %56 = vector.extract_strided_slice %53 {offsets = [0, 128], sizes = [8, 128], strides = [1, 1]} : vector<8x256xf32> to vector<8x128xf32>
    %57 = arith.truncf %56 : vector<8x128xf32> to vector<8x128xbf16>
    %c3 = arith.constant 3 : index
    %c0_35 = arith.constant 0 : index
    %c0_36 = arith.constant 0 : index
    %58 = vector.load %arg2[%c3, %c0_35, %c0_36] : memref<7x128x128xbf16, #tpu.memory_space<vmem>>, vector<1x128x128xbf16>
    %59 = vector.shape_cast %58 : vector<1x128x128xbf16> to vector<128x128xbf16>
    %c3_37 = arith.constant 3 : index
    %c0_38 = arith.constant 0 : index
    %c0_39 = arith.constant 0 : index
    %60 = vector.load %arg3[%c3_37, %c0_38, %c0_39] : memref<7x1x128xf32, #tpu.memory_space<vmem>>, vector<1x1x128xf32>
    %61 = vector.shape_cast %60 : vector<1x1x128xf32> to vector<1x128xf32>
    %cst_40 = arith.constant dense<0.000000e+00> : vector<8x128xf32>
    %62 = tpu.matmul %55, %59, %cst_40 {dimension_numbers = #tpu.dot_dimension_numbers<[1], [0], [0], [1], [0, 0, 1, 1], [], []>} : vector<8x128xbf16>, vector<128x128xbf16>, vector<8x128xf32> -> vector<8x128xf32>
    %63 = vector.broadcast %61 : vector<1x128xf32> to vector<8x128xf32>
    %64 = arith.addf %62, %63 : vector<8x128xf32>
    %c4 = arith.constant 4 : index
    %c0_41 = arith.constant 0 : index
    %c0_42 = arith.constant 0 : index
    %65 = vector.load %arg2[%c4, %c0_41, %c0_42] : memref<7x128x128xbf16, #tpu.memory_space<vmem>>, vector<1x128x128xbf16>
    %66 = vector.shape_cast %65 : vector<1x128x128xbf16> to vector<128x128xbf16>
    %c4_43 = arith.constant 4 : index
    %c0_44 = arith.constant 0 : index
    %c0_45 = arith.constant 0 : index
    %67 = vector.load %arg3[%c4_43, %c0_44, %c0_45] : memref<7x1x128xf32, #tpu.memory_space<vmem>>, vector<1x1x128xf32>
    %68 = vector.shape_cast %67 : vector<1x1x128xf32> to vector<1x128xf32>
    %cst_46 = arith.constant dense<0.000000e+00> : vector<8x128xf32>
    %69 = tpu.matmul %57, %66, %cst_46 {dimension_numbers = #tpu.dot_dimension_numbers<[1], [0], [0], [1], [0, 0, 1, 1], [], []>} : vector<8x128xbf16>, vector<128x128xbf16>, vector<8x128xf32> -> vector<8x128xf32>
    %70 = vector.broadcast %68 : vector<1x128xf32> to vector<8x128xf32>
    %71 = arith.addf %69, %70 : vector<8x128xf32>
    %cst_47 = arith.constant 0.000000e+00 : f32
    %72 = vector.broadcast %cst_47 : f32 to vector<8x128xf32>
    %73 = arith.maximumf %71, %72 : vector<8x128xf32>
    %74 = arith.truncf %73 : vector<8x128xf32> to vector<8x128xbf16>
    %c5 = arith.constant 5 : index
    %c0_48 = arith.constant 0 : index
    %c0_49 = arith.constant 0 : index
    %75 = vector.load %arg2[%c5, %c0_48, %c0_49] : memref<7x128x128xbf16, #tpu.memory_space<vmem>>, vector<1x128x128xbf16>
    %76 = vector.shape_cast %75 : vector<1x128x128xbf16> to vector<128x128xbf16>
    %c5_50 = arith.constant 5 : index
    %c0_51 = arith.constant 0 : index
    %c0_52 = arith.constant 0 : index
    %77 = vector.load %arg3[%c5_50, %c0_51, %c0_52] : memref<7x1x128xf32, #tpu.memory_space<vmem>>, vector<1x1x128xf32>
    %78 = vector.shape_cast %77 : vector<1x1x128xf32> to vector<1x128xf32>
    %cst_53 = arith.constant dense<0.000000e+00> : vector<8x128xf32>
    %79 = tpu.matmul %74, %76, %cst_53 {dimension_numbers = #tpu.dot_dimension_numbers<[1], [0], [0], [1], [0, 0, 1, 1], [], []>} : vector<8x128xbf16>, vector<128x128xbf16>, vector<8x128xf32> -> vector<8x128xf32>
    %80 = vector.broadcast %78 : vector<1x128xf32> to vector<8x128xf32>
    %81 = arith.addf %79, %80 : vector<8x128xf32>
    %cst_54 = arith.constant 0.000000e+00 : f32
    %82 = vector.broadcast %cst_54 : f32 to vector<8x128xf32>
    %83 = arith.maximumf %81, %82 : vector<8x128xf32>
    %84 = arith.truncf %83 : vector<8x128xf32> to vector<8x128xbf16>
    %c6 = arith.constant 6 : index
    %c0_55 = arith.constant 0 : index
    %c0_56 = arith.constant 0 : index
    %85 = vector.load %arg2[%c6, %c0_55, %c0_56] : memref<7x128x128xbf16, #tpu.memory_space<vmem>>, vector<1x128x128xbf16>
    %86 = vector.shape_cast %85 : vector<1x128x128xbf16> to vector<128x128xbf16>
    %c6_57 = arith.constant 6 : index
    %c0_58 = arith.constant 0 : index
    %c0_59 = arith.constant 0 : index
    %87 = vector.load %arg3[%c6_57, %c0_58, %c0_59] : memref<7x1x128xf32, #tpu.memory_space<vmem>>, vector<1x1x128xf32>
    %88 = vector.shape_cast %87 : vector<1x1x128xf32> to vector<1x128xf32>
    %cst_60 = arith.constant dense<0.000000e+00> : vector<8x128xf32>
    %89 = tpu.matmul %84, %86, %cst_60 {dimension_numbers = #tpu.dot_dimension_numbers<[1], [0], [0], [1], [0, 0, 1, 1], [], []>} : vector<8x128xbf16>, vector<128x128xbf16>, vector<8x128xf32> -> vector<8x128xf32>
    %90 = vector.broadcast %88 : vector<1x128xf32> to vector<8x128xf32>
    %91 = arith.addf %89, %90 : vector<8x128xf32>
    %92 = tpu.concatenate %44, %91, %64, %38, %39 in 1 : vector<8x128xf32>, vector<8x128xf32>, vector<8x128xf32>, vector<8x128xf32>, vector<8x128xf32> -> vector<8x640xf32>
    %c0_61 = arith.constant 0 : index
    %c0_62 = arith.constant 0 : index
    %93 = vector.load %arg8[%c0_61, %c0_62] : memref<8x640xf32, #tpu.memory_space<vmem>>, vector<8x640xf32>
    tpu.vector_store %arg8[%c0_61, %c0_62], %92 {strides = array<i32>} : memref<8x640xf32, #tpu.memory_space<vmem>>, vector<8x640xf32>,
    return
  }
  func.func @transform_0(%arg0: i32) -> (i32, i32) {
    %c0_i32 = arith.constant 0 : i32
    %c0_i32_0 = arith.constant 0 : i32
    return %arg0, %c0_i32 : i32, i32
  }
  func.func @transform_1(%arg0: i32) -> (i32, i32, i32) {
    %c0_i32 = arith.constant 0 : i32
    %c0_i32_0 = arith.constant 0 : i32
    %c0_i32_1 = arith.constant 0 : i32
    %c0_i32_2 = arith.constant 0 : i32
    return %c0_i32, %c0_i32_0, %c0_i32_1 : i32, i32, i32
  }
  func.func @transform_2(%arg0: i32) -> (i32, i32, i32) {
    %c0_i32 = arith.constant 0 : i32
    %c0_i32_0 = arith.constant 0 : i32
    %c0_i32_1 = arith.constant 0 : i32
    %c0_i32_2 = arith.constant 0 : i32
    return %c0_i32, %c0_i32_0, %c0_i32_1 : i32, i32, i32
  }
  func.func @transform_3(%arg0: i32) -> (i32, i32) {
    %c0_i32 = arith.constant 0 : i32
    %c0_i32_0 = arith.constant 0 : i32
    %c0_i32_1 = arith.constant 0 : i32
    return %c0_i32, %c0_i32_0 : i32, i32
  }
  func.func @transform_4(%arg0: i32) -> (i32, i32) {
    %c0_i32 = arith.constant 0 : i32
    %c0_i32_0 = arith.constant 0 : i32
    %c0_i32_1 = arith.constant 0 : i32
    return %c0_i32, %c0_i32_0 : i32, i32
  }
  func.func @transform_5(%arg0: i32) -> (i32, i32) {
    %c0_i32 = arith.constant 0 : i32
    %c0_i32_0 = arith.constant 0 : i32
    %c0_i32_1 = arith.constant 0 : i32
    return %c0_i32, %c0_i32_0 : i32, i32
  }
  func.func @transform_6(%arg0: i32) -> (i32, i32) {
    %c0_i32 = arith.constant 0 : i32
    %c0_i32_0 = arith.constant 0 : i32
    %c0_i32_1 = arith.constant 0 : i32
    return %c0_i32, %c0_i32_0 : i32, i32
  }
  func.func @transform_7(%arg0: i32) -> (i32, i32) {
    %c0_i32 = arith.constant 0 : i32
    %c0_i32_0 = arith.constant 0 : i32
    return %arg0, %c0_i32 : i32, i32
  }
}

</mosaic_0001>

<bundles_post_ra>
// kernel: tpu_custom_call.1
= control target key start
LH: loop header
LB: loop body
LE: loop exit
PB: predicated region body
PF: predicated region fallthrough
CT: control target
= control target key end

     0   :  { %12 = vsyncpa [#allocation3], 0  ;;  %s2099_s0 = inlined_call_operand.hbm [shape: f32[8,256], index: 0, kind: input, shape index: {}]   ;;  %s2100_s1 = inlined_call_operand.hbm [shape: bf16[7,128,128], index: 1, kind: input, shape index: {}]   ;;  %s2101_s2 = inlined_call_operand.vmem [shape: f32[7,1,128], index: 2, kind: input, shape index: {}]   ;;  %s2102_s3 = inlined_call_operand.hbm [shape: bf16[128,256], index: 3, kind: input, shape index: {}]   ;;  %s2103_s4 = inlined_call_operand.vmem [shape: f32[1,256], index: 4, kind: input, shape index: {}]   ;;  %s2104_s5 = inlined_call_operand.hbm [shape: bf16[256,256], index: 5, kind: input, shape index: {}]   ;;  %s2105_s6 = inlined_call_operand.vmem [shape: f32[1,256], index: 6, kind: input, shape index: {}]   ;;  %s2106_s7 = inlined_call_operand.hbm [shape: f32[8,640], index: 7, kind: output, shape index: {}]  }
   0x1   :  { %13 = vsyncpa [#allocation6], 0 }
   0x2   :  { %14 = vsyncpa [#allocation9], 0 }
   0x3   :  { %15 = vsyncpa [#allocation4], 0  ;;  %s1890_s24 = smov [#allocation5]   ;;  %s1772_s28 = scalar_lea.hbm %s2100_s1, 7168 }
   0x4   :  { %s31_s25 = sshll.u32 %s1890_s24, 4  ;;  %p1773_p0 = scmp.ne.s32.totalorder %s2100_s1, %s1772_s28  ;;  %s32_s25 = int_to_ptr.vmem [resolvable:$true] %s31_s25 }
   0x5   :  { %p1776_p1 = scmp.lt.u32.totalorder %s1772_s28, %s2100_s1 }
   0x7   :  { %p1778_p2 = pnand %p1776_p1, %p1773_p0 }
   0x9   :  { %1781 = shalt.err (!%p1778_p2)
}
   0xa   :  { %s1782_s10 = scalar_lea.vmem %s32_s25, 7168  ;;  %p1787_p4 = scmp.lt.s32.totalorder %s32_s25, %s32_s25 }
   0xb   :  { %p1783_p3 = scmp.ne.s32.totalorder %s32_s25, %s1782_s10  ;;  %p1788_p5 = scmp.lt.s32.totalorder %s1782_s10, %s1782_s10 }
   0xd   :  { %p1789_p6 = por %p1788_p5, %p1787_p4 }
   0xf   :  { %p1790_p7 = pnand %p1789_p6, %p1783_p3 }
  0x11   :  { %1793 = shalt.err (!%p1790_p7)
}
  0x12   :  { %s1891_s11 = smov 64   ;;  %s1892_s12 = smov 4  }
  0x13   :  { %37 = dma.hbm_to_vmem [thread:$0]  %s2100_s1, 7168, %s32_s25, [#allocation6], %s1891_s11, %s1891_s11, %s1892_s12  }
  0x14   :  { %s1893_s15 = smov [#allocation2]   ;;  %s1894_s17 = smov [#allocation7]  }
  0x15   :  { %s22_s16 = sshll.u32 %s1893_s15, 4  ;;  %s45_s18 = sshll.u32 %s1894_s17, 4  ;;  %s23_s16 = int_to_ptr.vmem [resolvable:$true] %s22_s16  ;;  %s46_s18 = int_to_ptr.vmem [resolvable:$true] %s45_s18 }
  0x16   :  { %s1794_s21 = scalar_lea.hbm %s2099_s0, 256 }
  0x17   :  { %p1795_p8 = scmp.ne.s32.totalorder %s2099_s0, %s1794_s21  ;;  %p1798_p9 = scmp.lt.u32.totalorder %s1794_s21, %s2099_s0 }
  0x19   :  { %p1800_p10 = pnand %p1798_p9, %p1795_p8 }
  0x1b   :  { %1803 = shalt.err (!%p1800_p10)
}
  0x1c   :  { %s1804_s1 = scalar_lea.vmem %s23_s16, 256  ;;  %p1809_p12 = scmp.lt.s32.totalorder %s23_s16, %s23_s16 }
  0x1d   :  { %p1805_p11 = scmp.ne.s32.totalorder %s23_s16, %s1804_s1  ;;  %p1810_p13 = scmp.lt.s32.totalorder %s1804_s1, %s1804_s1 }
  0x1f   :  { %p1811_p0 = por %p1810_p13, %p1809_p12 }
  0x21   :  { %p1812_p1 = pnand %p1811_p0, %p1805_p11 }
  0x23   :  { %1815 = shalt.err (!%p1812_p1)
}
  0x24   :  { %25 = dma.hbm_to_vmem [thread:$0]  %s2099_s0, 256, %s23_s16, [#allocation3]  }
  0x25   :  { %s1816_s30 = scalar_lea.hbm %s2102_s3, 2048 }
  0x26   :  { %p1817_p2 = scmp.ne.s32.totalorder %s2102_s3, %s1816_s30  ;;  %p1820_p3 = scmp.lt.u32.totalorder %s1816_s30, %s2102_s3 }
  0x28   :  { %p1822_p4 = pnand %p1820_p3, %p1817_p2 }
  0x2a   :  { %1825 = shalt.err (!%p1822_p4)
}
  0x2b   :  { %s1826_s12 = scalar_lea.vmem %s46_s18, 2048  ;;  %p1831_p6 = scmp.lt.s32.totalorder %s46_s18, %s46_s18 }
  0x2c   :  { %p1827_p5 = scmp.ne.s32.totalorder %s46_s18, %s1826_s12  ;;  %p1832_p7 = scmp.lt.s32.totalorder %s1826_s12, %s1826_s12 }
  0x2e   :  { %p1833_p8 = por %p1832_p7, %p1831_p6 }
  0x30   :  { %p1834_p9 = pnand %p1833_p8, %p1827_p5 }
  0x32   :  { %1837 = shalt.err (!%p1834_p9)
}
  0x33   :  { %s1895_s0 = smov 128   ;;  %s1896_s13 = smov 8  }
  0x34   :  { %51 = dma.hbm_to_vmem [thread:$0]  %s2102_s3, 2048, %s46_s18, [#allocation6], %s1895_s0, %s1895_s0, %s1896_s13  }
  0x35   :  { %s1897_s16 = smov [#allocation8]   ;;  %s1838_s21 = scalar_lea.hbm %s2104_s5, 4096 }
  0x36   :  { %s59_s17 = sshll.u32 %s1897_s16, 4  ;;  %p1839_p10 = scmp.ne.s32.totalorder %s2104_s5, %s1838_s21  ;;  %s60_s17 = int_to_ptr.vmem [resolvable:$true] %s59_s17 }
  0x37   :  { %p1842_p11 = scmp.lt.u32.totalorder %s1838_s21, %s2104_s5 }
  0x39   :  { %p1844_p12 = pnand %p1842_p11, %p1839_p10 }
  0x3b   :  { %1847 = shalt.err (!%p1844_p12)
}
  0x3c   :  { %s1848_s1 = scalar_lea.vmem %s60_s17, 4096  ;;  %p1853_p0 = scmp.lt.s32.totalorder %s60_s17, %s60_s17 }
  0x3d   :  { %p1849_p13 = scmp.ne.s32.totalorder %s60_s17, %s1848_s1  ;;  %p1854_p1 = scmp.lt.s32.totalorder %s1848_s1, %s1848_s1 }
  0x3f   :  { %p1855_p2 = por %p1854_p1, %p1853_p0 }
  0x41   :  { %p1856_p3 = pnand %p1855_p2, %p1849_p13 }
  0x43   :  { %1859 = shalt.err (!%p1856_p3)
}
  0x44   :  { %65 = dma.hbm_to_vmem [thread:$0]  %s2104_s5, 4096, %s60_s17, [#allocation9], %s1895_s0, %s1895_s0, %s1896_s13  }
  0x45   :  { %1882 = dma.done.wait [#allocation3], 256  }
  0x46   :  { %1883 = vsyncadd [#allocation3], 4294967040 }
  0x47   :  { %1884 = dma.done.wait [#allocation6], 9216  }
  0x48   :  { %1885 = vsyncadd [#allocation6], 4294958080 }
  0x49   :  { %1886 = dma.done.wait [#allocation9], 4096  }
  0x4a   :  { %1887 = vsyncadd [#allocation9], 4294963200  ;;  %v1898_v0 = vmov 0.0   ;;  %vm1899_vm0 = vmmov 0   ;;  %v1642_v1 = vld [vmem:[#allocation5] sm:$0xff]   ;;  %v1643_v2 = vld [vmem:[#allocation5 + $0x8] sm:$0xff]  }
  0x4b   :  { %1490 = vmatprep.subr.bf16.mxu0 %v1898_v0  ;;  %1506 = vmatprep.mubr.msk.bf16.mxu0 %vm1899_vm0, %v1898_v0  ;;  %v1644_v3 = vld [vmem:[#allocation5 + $0x10] sm:$0xff]   ;;  %v1650_v4 = vld [vmem:[#allocation5 + $0x40] sm:$0xff]   ;;  %v1645_v5 = vld [vmem:[#allocation5 + $0x18] sm:$0xff]   ;;  %v1900_v59 = vmov 0   ;;  %s1901_s17 = smov [#allocation10]  }
  0x4c   :  { %1510 = vmatprep.subr.bf16.mxu1 %v1898_v0  ;;  %1526 = vmatprep.mubr.msk.bf16.mxu1 %vm1899_vm0, %v1898_v0  ;;  %v1651_v6 = vld [vmem:[#allocation5 + $0x48] sm:$0xff]   ;;  %v1646_v7 = vld [vmem:[#allocation5 + $0x20] sm:$0xff]   ;;  %v1652_v8 = vld [vmem:[#allocation5 + $0x50] sm:$0xff]   ;;  %s1299_s19 = sshll.u32 %s1901_s17, 4  ;;  %s1300_s19 = int_to_ptr.vmem [resolvable:$true] %s1299_s19 }
  0x4d   :  { %1491 = vmatpush3.bf16.msra.mxu0 %v1642_v1  ;;  %1511 = vmatpush3.bf16.msra.mxu1 %v1650_v4  ;;  %v1647_v9 = vld [vmem:[#allocation5 + $0x28] sm:$0xff]   ;;  %v1653_v10 = vld [vmem:[#allocation5 + $0x58] sm:$0xff]   ;;  %v1648_v11 = vld [vmem:[#allocation5 + $0x30] sm:$0xff]   ;;  %s1860_s20 = scalar_lea.vmem %s1300_s19, 640  ;;  %p1865_p5 = scmp.lt.s32.totalorder %s1300_s19, %s1300_s19 }
  0x4e   :  { %1492 = vmatprep.subr.bf16.mxu0 %v1898_v0  ;;  %1512 = vmatprep.subr.bf16.mxu1 %v1898_v0  ;;  %v1654_v12 = vld [vmem:[#allocation5 + $0x60] sm:$0xff]   ;;  %v1649_v13 = vld [vmem:[#allocation5 + $0x38] sm:$0xff]   ;;  %v81_v14 = vld [vmem:[#allocation2] sm:$0xff]  ;;  %p1861_p4 = scmp.ne.s32.totalorder %s1300_s19, %s1860_s20  ;;  %p1866_p6 = scmp.lt.s32.totalorder %s1860_s20, %s1860_s20 }
  0x4f   :  { %v1655_v15 = vld [vmem:[#allocation5 + $0x68] sm:$0xff]   ;;  %v82_v16 = vpack.c.bf16 %v81_v14, %v81_v14  ;;  %v1656_v17 = vld [vmem:[#allocation5 + $0x70] sm:$0xff]   ;;  %v1657_v18 = vld [vmem:[#allocation5 + $0x78] sm:$0xff]  }
  0x50   :  { %v1658_v19 = vld [vmem:[#allocation5 + $0x80] sm:$0xff]   ;;  %v1659_v20 = vld [vmem:[#allocation5 + $0x88] sm:$0xff]   ;;  %v1660_v21 = vld [vmem:[#allocation5 + $0x90] sm:$0xff]   ;;  %p1867_p7 = por %p1866_p6, %p1865_p5 }
  0x51   :  { %1493 = vmatpush3.bf16.msra.mxu0 %v1643_v2  ;;  %1513 = vmatpush3.bf16.msra.mxu1 %v1651_v6  ;;  %v1661_v22 = vld [vmem:[#allocation5 + $0x98] sm:$0xff]   ;;  %v1662_v23 = vld [vmem:[#allocation5 + $0xa0] sm:$0xff]   ;;  %v1663_v24 = vld [vmem:[#allocation5 + $0xa8] sm:$0xff]  }
  0x52   :  { %1494 = vmatprep.subr.bf16.mxu0 %v1898_v0  ;;  %1514 = vmatprep.subr.bf16.mxu1 %v1898_v0  ;;  %v1310_v25 = vld [vmem:[%s2101_s2] ss:$0 sm:$0xff]  ;;  %v1665_v34 = vld [vmem:[#allocation5 + $0xb8] sm:$0xff]   ;;  %v1666_v35 = vld [vmem:[#allocation7] ss:$8 sps:$4 sm:$0xff]   ;;  %p1868_p8 = pnand %p1867_p7, %p1861_p4 }
  0x53   :  { %v1664_v33 = vld [vmem:[#allocation5 + $0xb0] sm:$0xff]   ;;  %v1668_v36 = vld [vmem:[#allocation7 + $0x4] ss:$8 sps:$4 sm:$0xff]   ;;  %v1672_v40 = vld [vmem:[#allocation7 + $0x20] ss:$8 sps:$4 sm:$0xff]  }
  0x54   :  { %v1671_v37 = vld [vmem:[#allocation7 + $0x14] ss:$8 sps:$4 sm:$0xff]   ;;  %v1669_v38 = vld [vmem:[#allocation7 + $0x10] ss:$8 sps:$4 sm:$0xff]   ;;  %v1674_v39 = vld [vmem:[#allocation7 + $0x24] ss:$8 sps:$4 sm:$0xff]  }
  0x55   :  { %1495 = vmatpush3.bf16.msra.mxu0 %v1644_v3  ;;  %1515 = vmatpush3.bf16.msra.mxu1 %v1652_v8  ;;  %v1677_v41 = vld [vmem:[#allocation7 + $0x34] ss:$8 sps:$4 sm:$0xff]   ;;  %v1675_v42 = vld [vmem:[#allocation7 + $0x30] ss:$8 sps:$4 sm:$0xff]   ;;  %v1680_v43 = vld [vmem:[#allocation7 + $0x44] ss:$8 sps:$4 sm:$0xff]  }
  0x56   :  { %1496 = vmatprep.subr.bf16.mxu0 %v1898_v0  ;;  %1516 = vmatprep.subr.bf16.mxu1 %v1898_v0  ;;  %v1678_v44 = vld [vmem:[#allocation7 + $0x40] ss:$8 sps:$4 sm:$0xff]   ;;  %v1683_v45 = vld [vmem:[#allocation7 + $0x54] ss:$8 sps:$4 sm:$0xff]   ;;  %v1681_v46 = vld [vmem:[#allocation7 + $0x50] ss:$8 sps:$4 sm:$0xff]  }
  0x57   :  { %v1686_v47 = vld [vmem:[#allocation7 + $0x64] ss:$8 sps:$4 sm:$0xff]   ;;  %v1684_v48 = vld [vmem:[#allocation7 + $0x60] ss:$8 sps:$4 sm:$0xff]   ;;  %v1320_v49 = vld [vmem:[%s2101_s2 + $0x1] ss:$0 sm:$0xff] }
  0x58   :  { %v1689_v57 = vld [vmem:[#allocation7 + $0x74] ss:$8 sps:$4 sm:$0xff]   ;;  %v1687_v58 = vld [vmem:[#allocation7 + $0x70] ss:$8 sps:$4 sm:$0xff]   ;;  %v1690_v60 = vld [vmem:[#allocation8] ss:$8 sps:$4 sm:$0xff]  }
  0x59   :  { %1497 = vmatpush3.bf16.msra.mxu0 %v1645_v5  ;;  %1517 = vmatpush3.bf16.msra.mxu1 %v1653_v10  ;;  %v1692_v61 = vld [vmem:[#allocation8 + $0x4] ss:$8 sps:$4 sm:$0xff]   ;;  %v1695_v62 = vld [vmem:[#allocation8 + $0x14] ss:$8 sps:$4 sm:$0xff]   ;;  %v1693_v63 = vld [vmem:[#allocation8 + $0x10] ss:$8 sps:$4 sm:$0xff]  }
  0x5a   :  { %1498 = vmatprep.subr.bf16.mxu0 %v1898_v0  ;;  %1518 = vmatprep.subr.bf16.mxu1 %v1898_v0  ;;  %v1698_v1 = vld [vmem:[#allocation8 + $0x24] ss:$8 sps:$4 sm:$0xff]   ;;  %v1696_v2 = vld [vmem:[#allocation8 + $0x20] ss:$8 sps:$4 sm:$0xff]   ;;  %v1701_v3 = vld [vmem:[#allocation8 + $0x34] ss:$8 sps:$4 sm:$0xff]  }
  0x5b   :  { %v1699_v4 = vld [vmem:[#allocation8 + $0x30] ss:$8 sps:$4 sm:$0xff]   ;;  %v1704_v5 = vld [vmem:[#allocation8 + $0x44] ss:$8 sps:$4 sm:$0xff]   ;;  %v1702_v6 = vld [vmem:[#allocation8 + $0x40] ss:$8 sps:$4 sm:$0xff]  }
  0x5c   :  { %v1705_v8 = vld [vmem:[#allocation8 + $0x50] ss:$8 sps:$4 sm:$0xff]   ;;  %v1708_v10 = vld [vmem:[#allocation8 + $0x60] ss:$8 sps:$4 sm:$0xff]  }
  0x5d   :  { %1499 = vmatpush3.bf16.msra.mxu0 %v1646_v7  ;;  %1519 = vmatpush3.bf16.msra.mxu1 %v1654_v12  ;;  %v1707_v7 = vld [vmem:[#allocation8 + $0x54] ss:$8 sps:$4 sm:$0xff]   ;;  %v1711_v12 = vld [vmem:[#allocation8 + $0x70] ss:$8 sps:$4 sm:$0xff]   ;;  %v1714_v14 = vld [vmem:[#allocation8 + $0x80] ss:$8 sps:$4 sm:$0xff]  }
  0x5e   :  { %1500 = vmatprep.subr.bf16.mxu0 %v1898_v0  ;;  %1520 = vmatprep.subr.bf16.mxu1 %v1898_v0 }
  0x61   :  { %1501 = vmatpush3.bf16.msra.mxu0 %v1647_v9  ;;  %1521 = vmatpush3.bf16.msra.mxu1 %v1655_v15  ;;  %v1710_v9 = vld [vmem:[#allocation8 + $0x64] ss:$8 sps:$4 sm:$0xff]   ;;  %v1719_v15 = vld [vmem:[#allocation8 + $0x94] ss:$8 sps:$4 sm:$0xff]  }
  0x62   :  { %1502 = vmatprep.subr.bf16.mxu0 %v1898_v0  ;;  %1522 = vmatprep.subr.bf16.mxu1 %v1898_v0 }
  0x65   :  { %1503 = vmatpush3.bf16.msra.mxu0 %v1648_v11  ;;  %1523 = vmatpush3.bf16.msra.mxu1 %v1656_v17  ;;  %v1713_v11 = vld [vmem:[#allocation8 + $0x74] ss:$8 sps:$4 sm:$0xff]   ;;  %v1330_v17 = vld [vmem:[%s2101_s2 + $0x2] ss:$0 sm:$0xff] }
  0x66   :  { %1504 = vmatprep.subr.bf16.mxu0 %v1898_v0  ;;  %1524 = vmatprep.subr.bf16.mxu1 %v1898_v0 }
  0x69   :  { %1505 = vmatpush3.bf16.msra.mxu0 %v1649_v13  ;;  %1525 = vmatpush3.bf16.msra.mxu1 %v1657_v18  ;;  %v1716_v13 = vld [vmem:[#allocation8 + $0x84] ss:$8 sps:$4 sm:$0xff]  }
  0x6a   :  { %1530 = vmatprep.subr.bf16.mxu0 %v1898_v0  ;;  %535 = vmatprep.subr.bf16.mxu1 %v1668_v36  ;;  %v1735_v36 = vld [vmem:[#allocation8 + $0xf0] ss:$8 sps:$4 sm:$0xff]  }
  0x6c   :  { %1507 = vmatmul.mubr.bf16.vlgmr.msra.gmra.mrb[0].mxu0 %v82_v16  ;;  %v1717_v16 = vld [vmem:[#allocation8 + $0x90] ss:$8 sps:$4 sm:$0xff]  }
  0x6d   :  { %1546 = vmatprep.mubr.msk.bf16.mxu0 %vm1899_vm0, %v1898_v0  ;;  %1531 = vmatpush3.bf16.msra.mxu0 %v1658_v19 }
  0x6e   :  { %1532 = vmatprep.subr.bf16.mxu0 %v1898_v0 }
  0x71   :  { %1533 = vmatpush3.bf16.msra.mxu0 %v1659_v20 }
  0x72   :  { %1534 = vmatprep.subr.bf16.mxu0 %v1898_v0 }
  0x75   :  { %1535 = vmatpush3.bf16.msra.mxu0 %v1660_v21 }
  0x76   :  { %1536 = vmatprep.subr.bf16.mxu0 %v1898_v0 }
  0x79   :  { %1537 = vmatpush3.bf16.msra.mxu0 %v1661_v22 }
  0x7a   :  { %1538 = vmatprep.subr.bf16.mxu0 %v1898_v0 }
  0x7d   :  { %1539 = vmatpush3.bf16.msra.mxu0 %v1662_v23 }
  0x7e   :  { %1540 = vmatprep.subr.bf16.mxu0 %v1898_v0 }
  0x81   :  { %1541 = vmatpush3.bf16.msra.mxu0 %v1663_v24 }
  0x82   :  { %1542 = vmatprep.subr.bf16.mxu0 %v1898_v0 }
  0x85   :  { %1543 = vmatpush3.bf16.msra.mxu0 %v1664_v33  ;;  %v1734_v33 = vld [vmem:[#allocation8 + $0xe4] ss:$8 sps:$4 sm:$0xff]  }
  0x86   :  { %1544 = vmatprep.subr.bf16.mxu0 %v1898_v0 }
  0x89   :  { %1545 = vmatpush3.bf16.msra.mxu0 %v1665_v34  ;;  %v1732_v34 = vld [vmem:[#allocation8 + $0xe0] ss:$8 sps:$4 sm:$0xff]  }
  0x8a   :  { %787 = vmatprep.subr.bf16.mxu0 %v1692_v61 }
 0x13f   :  { %v189_v26 = vpop.f32.mrb[0].mxu0 }
 0x140   :  { %v190_v27 = vadd.f32 %v1310_v25, %v189_v26  ;;  %v1508_v28 = vpop.f32.mrb[1].mxu0  ;;  %v1722_v25 = vld [vmem:[#allocation8 + $0xa4] ss:$8 sps:$4 sm:$0xff]   ;;  %v1720_v26 = vld [vmem:[#allocation8 + $0xa0] ss:$8 sps:$4 sm:$0xff]  }
 0x141   :  { %v192_v29 = vpop.f32.mrb[2].mxu0  ;;  %v1723_v28 = vld [vmem:[#allocation8 + $0xb0] ss:$8 sps:$4 sm:$0xff]  }
 0x142   :  { %v195_v30 = vmax.f32 %v190_v27, 0.0  ;;  %v1509_v31 = vpop.f32.mrb[3].mxu0  ;;  %v1725_v27 = vld [vmem:[#allocation8 + $0xb4] ss:$8 sps:$4 sm:$0xff]   ;;  %v1726_v29 = vld [vmem:[#allocation8 + $0xc0] ss:$8 sps:$4 sm:$0xff]  }
 0x143   :  { %v1731_v31 = vld [vmem:[#allocation8 + $0xd4] ss:$8 sps:$4 sm:$0xff]  }
 0x144   :  { %v196_v32 = vpack.c.bf16 %v195_v30, %v195_v30  ;;  %v1728_v30 = vld [vmem:[#allocation8 + $0xc4] ss:$8 sps:$4 sm:$0xff]  }
 0x146   :  { %1527 = vmatmul.mubr.bf16.vlgmr.msra.gmra.mrb[0].mxu1 %v196_v32  ;;  %v1729_v32 = vld [vmem:[#allocation8 + $0xd0] ss:$8 sps:$4 sm:$0xff]  }
 0x147   :  { %536 = vmatpush1.bf16.msra.mxu1 %v1666_v35  ;;  %567 = vmatprep.mubr.bf16.mxu1 %v1900_v59  ;;  %v1737_v35 = vld [vmem:[#allocation8 + $0xf4] ss:$8 sps:$4 sm:$0xff]  }
 0x148   :  { %537 = vmatprep.subr.bf16.mxu1 %v1671_v37  ;;  %v1738_v37 = vld [vmem:[#allocation5 + $0xc0] sm:$0xff]   ;;  %v83_v59 = vld [vmem:[#allocation2 + $0x8] sm:$0xff] }
 0x14b   :  { %538 = vmatpush1.bf16.msra.mxu1 %v1669_v38  ;;  %v1739_v38 = vld [vmem:[#allocation5 + $0xc8] sm:$0xff]  }
 0x14c   :  { %539 = vmatprep.subr.bf16.mxu1 %v1674_v39  ;;  %v1740_v39 = vld [vmem:[#allocation5 + $0xd0] sm:$0xff]  }
 0x14f   :  { %540 = vmatpush1.bf16.msra.mxu1 %v1672_v40  ;;  %v1741_v40 = vld [vmem:[#allocation5 + $0xd8] sm:$0xff]  }
 0x150   :  { %541 = vmatprep.subr.bf16.mxu1 %v1677_v41  ;;  %v1742_v41 = vld [vmem:[#allocation5 + $0xe0] sm:$0xff]  }
 0x153   :  { %542 = vmatpush1.bf16.msra.mxu1 %v1675_v42  ;;  %v1743_v42 = vld [vmem:[#allocation5 + $0xe8] sm:$0xff]  }
 0x154   :  { %543 = vmatprep.subr.bf16.mxu1 %v1680_v43  ;;  %v1744_v43 = vld [vmem:[#allocation5 + $0xf0] sm:$0xff]  }
 0x157   :  { %544 = vmatpush1.bf16.msra.mxu1 %v1678_v44  ;;  %v445_v44 = vlaneseq }
 0x158   :  { %545 = vmatprep.subr.bf16.mxu1 %v1683_v45 }
 0x159   :  { %v446_v45 = vshrl.u32 %v445_v44, 7  ;;  %v1398_v44 = vld [vmem:[%s2101_s2 + $0x4] ss:$0 sm:$0xff] }
 0x15b   :  { %546 = vmatpush1.bf16.msra.mxu1 %v1681_v46  ;;  %v447_v46 = vsub.s32 0, %v446_v45 }
 0x15c   :  { %547 = vmatprep.subr.bf16.mxu1 %v1686_v47  ;;  %v443_v47 = vld [vmem:[%s2103_s4] sm:$0x3] }
 0x15f   :  { %548 = vmatpush1.bf16.msra.mxu1 %v1684_v48  ;;  %v451_v48 = vsub.s32 1, %v446_v45 }
 0x160   :  { %549 = vmatprep.subr.bf16.mxu1 %v1689_v57 }
 0x163   :  { %550 = vmatpush1.bf16.msra.mxu1 %v1687_v58 }
 0x164   :  { %1550 = vmatprep.subr.bf16.mxu1 %v1898_v0 }
 0x219   :  { %v304_v50 = vpop.f32.mrb[0].mxu1 }
 0x21a   :  { %v305_v51 = vadd.f32 %v1320_v49, %v304_v50  ;;  %v1528_v52 = vpop.f32.mrb[1].mxu1  ;;  %v448_v49 = vrot.slane %v443_v47, %v447_v46  ;;  %v452_v50 = vrot.slane %v443_v47, %v451_v48 }
 0x21b   :  { %v307_v53 = vpop.f32.mrb[2].mxu1 }
 0x21c   :  { %v310_v54 = vmax.f32 %v305_v51, 0.0  ;;  %v1529_v55 = vpop.f32.mrb[3].mxu1 }
 0x21e   :  { %v311_v56 = vpack.c.bf16 %v310_v54, %v310_v54 }
 0x220   :  { %1547 = vmatmul.mubr.bf16.vlgmr.msra.gmra.mrb[4].mxu0 %v311_v56 }
 0x221   :  { %788 = vmatpush1.bf16.msra.mxu0 %v1690_v60 }
 0x222   :  { %789 = vmatprep.subr.bf16.mxu0 %v1695_v62 }
 0x225   :  { %790 = vmatpush1.bf16.msra.mxu0 %v1693_v63 }
 0x226   :  { %791 = vmatprep.subr.bf16.mxu0 %v1698_v1 }
 0x229   :  { %792 = vmatpush1.bf16.msra.mxu0 %v1696_v2  ;;  %v1745_v2 = vld [vmem:[#allocation5 + $0xf8] sm:$0xff]  }
 0x22a   :  { %793 = vmatprep.subr.bf16.mxu0 %v1701_v3  ;;  %v615_v3 = vld [vmem:[%s2105_s6] sm:$0x3] }
 0x22d   :  { %794 = vmatpush1.bf16.msra.mxu0 %v1699_v4  ;;  %v620_v4 = vrot.slane %v615_v3, %v447_v46 }
 0x22e   :  { %795 = vmatprep.subr.bf16.mxu0 %v1704_v5 }
 0x231   :  { %796 = vmatpush1.bf16.msra.mxu0 %v1702_v6 }
 0x232   :  { %797 = vmatprep.subr.bf16.mxu0 %v1707_v7 }
 0x235   :  { %798 = vmatpush1.bf16.msra.mxu0 %v1705_v8 }
 0x236   :  { %799 = vmatprep.subr.bf16.mxu0 %v1710_v9 }
 0x239   :  { %800 = vmatpush1.bf16.msra.mxu0 %v1708_v10 }
 0x23a   :  { %801 = vmatprep.subr.bf16.mxu0 %v1713_v11  ;;  %v1746_v11 = vld [vmem:[#allocation5 + $0x100] sm:$0xff]  }
 0x23d   :  { %802 = vmatpush1.bf16.msra.mxu0 %v1711_v12 }
 0x23e   :  { %803 = vmatprep.subr.bf16.mxu0 %v1716_v13  ;;  %v1747_v13 = vld [vmem:[#allocation5 + $0x108] sm:$0xff]  }
 0x241   :  { %804 = vmatpush1.bf16.msra.mxu0 %v1714_v14  ;;  %v1748_v14 = vld [vmem:[#allocation5 + $0x110] sm:$0xff]  }
 0x242   :  { %805 = vmatprep.subr.bf16.mxu0 %v1719_v15  ;;  %v1749_v15 = vld [vmem:[#allocation5 + $0x118] sm:$0xff]  }
 0x245   :  { %806 = vmatpush1.bf16.msra.mxu0 %v1717_v16  ;;  %v1750_v16 = vld [vmem:[#allocation5 + $0x120] sm:$0xff]  }
 0x246   :  { %807 = vmatprep.subr.bf16.mxu0 %v1722_v25  ;;  %v1755_v25 = vld [vmem:[#allocation5 + $0x148] sm:$0xff]  }
 0x249   :  { %808 = vmatpush1.bf16.msra.mxu0 %v1720_v26  ;;  %v1756_v26 = vld [vmem:[#allocation5 + $0x150] sm:$0xff]  }
 0x24a   :  { %809 = vmatprep.subr.bf16.mxu0 %v1725_v27  ;;  %v1757_v27 = vld [vmem:[#allocation5 + $0x158] sm:$0xff]  }
 0x24d   :  { %810 = vmatpush1.bf16.msra.mxu0 %v1723_v28  ;;  %v1758_v28 = vld [vmem:[#allocation5 + $0x160] sm:$0xff]  }
 0x24e   :  { %811 = vmatprep.subr.bf16.mxu0 %v1728_v30  ;;  %v1760_v30 = vld [vmem:[#allocation5 + $0x170] sm:$0xff]  }
 0x251   :  { %812 = vmatpush1.bf16.msra.mxu0 %v1726_v29  ;;  %v1759_v29 = vld [vmem:[#allocation5 + $0x168] sm:$0xff]  }
 0x252   :  { %813 = vmatprep.subr.bf16.mxu0 %v1731_v31  ;;  %v1761_v31 = vld [vmem:[#allocation5 + $0x178] sm:$0xff]  }
 0x255   :  { %814 = vmatpush1.bf16.msra.mxu0 %v1729_v32  ;;  %v1762_v32 = vld [vmem:[#allocation5 + $0x180] sm:$0xff]  }
 0x256   :  { %815 = vmatprep.subr.bf16.mxu0 %v1734_v33  ;;  %v1763_v33 = vld [vmem:[#allocation5 + $0x188] sm:$0xff]  }
 0x259   :  { %816 = vmatpush1.bf16.msra.mxu0 %v1732_v34  ;;  %v1764_v34 = vld [vmem:[#allocation5 + $0x190] sm:$0xff]  }
 0x25a   :  { %817 = vmatprep.subr.bf16.mxu0 %v1737_v35  ;;  %v1765_v35 = vld [vmem:[#allocation5 + $0x198] sm:$0xff]  }
 0x25d   :  { %818 = vmatpush1.bf16.msra.mxu0 %v1735_v36  ;;  %v1766_v36 = vld [vmem:[#allocation5 + $0x1a0] sm:$0xff]  }
 0x25e   :  { %1590 = vmatprep.subr.bf16.mxu0 %v1898_v0 }
 0x2f3   :  { %v419_v18 = vpop.f32.mrb[4].mxu0 }
 0x2f4   :  { %v420_v19 = vadd.f32 %v1330_v17, %v419_v18  ;;  %v1548_v20 = vpop.f32.mrb[5].mxu0  ;;  %v1751_v17 = vld [vmem:[#allocation5 + $0x128] sm:$0xff]   ;;  %v624_v18 = vrot.slane %v615_v3, %v451_v48 }
 0x2f5   :  { %v422_v21 = vpop.f32.mrb[6].mxu0 }
 0x2f6   :  { %v425_v22 = vmax.f32 %v420_v19, 0.0  ;;  %v1549_v23 = vpop.f32.mrb[7].mxu0  ;;  %v1752_v19 = vld [vmem:[#allocation5 + $0x130] sm:$0xff]   ;;  %v1753_v21 = vld [vmem:[#allocation5 + $0x138] sm:$0xff]  }
 0x2f8   :  { %v426_v24 = vpack.c.bf16 %v425_v22, %v425_v22 }
 0x2fa   :  { %568 = vmatmul.mubr.bf16.vlgmr.msra.gmra.mrb[4].mxu1 %v426_v24  ;;  %v1754_v24 = vld [vmem:[#allocation5 + $0x140] sm:$0xff]  }
 0x2fb   :  { %1566 = vmatprep.mubr.msk.bf16.mxu1 %vm1899_vm0, %v1898_v0  ;;  %1551 = vmatpush3.bf16.msra.mxu1 %v1738_v37  ;;  %v1767_v37 = vld [vmem:[#allocation5 + $0x1a8] sm:$0xff]  }
 0x2fc   :  { %1552 = vmatprep.subr.bf16.mxu1 %v1898_v0 }
 0x2ff   :  { %1553 = vmatpush3.bf16.msra.mxu1 %v1739_v38  ;;  %v1388_v38 = vld [vmem:[%s2101_s2 + $0x3] ss:$0 sm:$0xff] }
 0x300   :  { %1554 = vmatprep.subr.bf16.mxu1 %v1898_v0 }
 0x303   :  { %1555 = vmatpush3.bf16.msra.mxu1 %v1740_v39 }
 0x304   :  { %1556 = vmatprep.subr.bf16.mxu1 %v1898_v0 }
 0x307   :  { %1557 = vmatpush3.bf16.msra.mxu1 %v1741_v40 }
 0x308   :  { %1558 = vmatprep.subr.bf16.mxu1 %v1898_v0 }
 0x30b   :  { %1559 = vmatpush3.bf16.msra.mxu1 %v1742_v41 }
 0x30c   :  { %1560 = vmatprep.subr.bf16.mxu1 %v1898_v0 }
 0x30f   :  { %1561 = vmatpush3.bf16.msra.mxu1 %v1743_v42 }
 0x310   :  { %1562 = vmatprep.subr.bf16.mxu1 %v1898_v0 }
 0x313   :  { %1563 = vmatpush3.bf16.msra.mxu1 %v1744_v43 }
 0x314   :  { %1564 = vmatprep.subr.bf16.mxu1 %v1898_v0 }
 0x317   :  { %1565 = vmatpush3.bf16.msra.mxu1 %v1745_v2 }
 0x318   :  { %1570 = vmatprep.subr.bf16.mxu1 %v1898_v0 }
 0x3cd   :  { %v569_v51 = vpop.f32.mrb[4].mxu1 }
 0x3ce   :  { %v570_v52 = vadd.f32 %v569_v51, %v448_v49  ;;  %v571_v53 = vpop.f32.mrb[5].mxu1 }
 0x3cf   :  { %v572_v54 = vadd.f32 %v571_v53, %v452_v50  ;;  %v573_v55 = vpop.f32.mrb[6].mxu1  ;;  %v1769_v53 = vld [vmem:[#allocation5 + $0x1b8] sm:$0xff]  }
 0x3d0   :  { %1291 = vst [vmem:[#allocation10 + $0x18] sm:$0xff] %v570_v52  ;;  %v574_v56 = vpop.f32.mrb[7].mxu1  ;;  %v581_v1 = vpack.c.bf16 %v570_v52, %v570_v52 }
 0x3d1   :  { %v576_v57 = vmul.f32 0.5, %v572_v54  ;;  %1292 = vst [vmem:[#allocation10 + $0x20] sm:$0xff] %v572_v54  ;;  %v1408_v54 = vld [vmem:[%s2101_s2 + $0x5] ss:$0 sm:$0xff] }
 0x3d3   :  { %v577_v58 = vmul.f32 1.442695, %v576_v57 }
 0x3d5   :  { %1770 = vpow2.f32 %v577_v58 }
 0x3df   :  { %v1771_v60 = vpop.eup %1770 }
 0x3e0   :  { %v579_v61 = vmul.f32 %v1771_v60, %v83_v59 }
 0x3e2   :  { %v580_v62 = vadd.f32 %v579_v61, %v570_v52  ;;  %v1768_v52 = vld [vmem:[#allocation5 + $0x1b0] sm:$0xff]  }
 0x3e4   :  { %v582_v63 = vpack.c.bf16 %v580_v62, %v580_v62  ;;  %1288 = vst [vmem:[#allocation10] sm:$0xff] %v580_v62  ;;  %v1418_v62 = vld [vmem:[%s2101_s2 + $0x6] ss:$0 sm:$0xff] }
 0x3e6   :  { %819 = vmatprep.mubr.bf16.mxu0 %v582_v63 }
 0x3e7   :  { %820 = vmatmul.mubr.bf16.vlgmr.msra.gmra.mrb[8].mxu0 %v581_v1 }
 0x3e8   :  { %1606 = vmatprep.mubr.msk.bf16.mxu0 %vm1899_vm0, %v1898_v0  ;;  %1591 = vmatpush3.bf16.msra.mxu0 %v1754_v24 }
 0x3e9   :  { %1592 = vmatprep.subr.bf16.mxu0 %v1898_v0 }
 0x3ec   :  { %1593 = vmatpush3.bf16.msra.mxu0 %v1755_v25 }
 0x3ed   :  { %1594 = vmatprep.subr.bf16.mxu0 %v1898_v0 }
 0x3f0   :  { %1595 = vmatpush3.bf16.msra.mxu0 %v1756_v26 }
 0x3f1   :  { %1596 = vmatprep.subr.bf16.mxu0 %v1898_v0 }
 0x3f4   :  { %1597 = vmatpush3.bf16.msra.mxu0 %v1757_v27 }
 0x3f5   :  { %1598 = vmatprep.subr.bf16.mxu0 %v1898_v0 }
 0x3f8   :  { %1599 = vmatpush3.bf16.msra.mxu0 %v1758_v28 }
 0x3f9   :  { %1600 = vmatprep.subr.bf16.mxu0 %v1898_v0 }
 0x3fc   :  { %1601 = vmatpush3.bf16.msra.mxu0 %v1759_v29 }
 0x3fd   :  { %1602 = vmatprep.subr.bf16.mxu0 %v1898_v0 }
 0x400   :  { %1603 = vmatpush3.bf16.msra.mxu0 %v1760_v30 }
 0x401   :  { %1604 = vmatprep.subr.bf16.mxu0 %v1898_v0 }
 0x404   :  { %1605 = vmatpush3.bf16.msra.mxu0 %v1761_v31 }
 0x4ba   :  { %v821_v5 = vpop.f32.mrb[8].mxu0 }
 0x4bb   :  { %v822_v6 = vadd.f32 %v821_v5, %v620_v4  ;;  %v823_v7 = vpop.f32.mrb[9].mxu0 }
 0x4bc   :  { %v825_v8 = vpop.f32.mrb[10].mxu0  ;;  %v824_v20 = vadd.f32 %v823_v7, %v624_v18 }
 0x4bd   :  { %v828_v9 = vmax.f32 %v822_v6, 0.0  ;;  %v826_v10 = vpop.f32.mrb[11].mxu0 }
 0x4be   :  { %v829_v22 = vmax.f32 %v824_v20, 0.0 }
 0x4bf   :  { %v830_v12 = vpack.c.bf16 %v828_v9, %v828_v9 }
 0x4c0   :  { %v831_v23 = vpack.c.bf16 %v829_v22, %v829_v22 }
 0x4c1   :  { %1567 = vmatmul.mubr.bf16.vlgmr.msra.gmra.mrb[8].mxu1 %v830_v12 }
 0x4c2   :  { %1571 = vmatpush3.bf16.msra.mxu1 %v1746_v11  ;;  %1586 = vmatprep.mubr.msk.bf16.mxu1 %vm1899_vm0, %v1898_v0 }
 0x4c3   :  { %1572 = vmatprep.subr.bf16.mxu1 %v1898_v0 }
 0x4c6   :  { %1573 = vmatpush3.bf16.msra.mxu1 %v1747_v13 }
 0x4c7   :  { %1574 = vmatprep.subr.bf16.mxu1 %v1898_v0 }
 0x4ca   :  { %1575 = vmatpush3.bf16.msra.mxu1 %v1748_v14 }
 0x4cb   :  { %1576 = vmatprep.subr.bf16.mxu1 %v1898_v0 }
 0x4ce   :  { %1577 = vmatpush3.bf16.msra.mxu1 %v1749_v15 }
 0x4cf   :  { %1578 = vmatprep.subr.bf16.mxu1 %v1898_v0 }
 0x4d2   :  { %1579 = vmatpush3.bf16.msra.mxu1 %v1750_v16 }
 0x4d3   :  { %1580 = vmatprep.subr.bf16.mxu1 %v1898_v0 }
 0x4d6   :  { %1581 = vmatpush3.bf16.msra.mxu1 %v1751_v17 }
 0x4d7   :  { %1582 = vmatprep.subr.bf16.mxu1 %v1898_v0 }
 0x4da   :  { %1583 = vmatpush3.bf16.msra.mxu1 %v1752_v19 }
 0x4db   :  { %1584 = vmatprep.subr.bf16.mxu1 %v1898_v0 }
 0x4de   :  { %1585 = vmatpush3.bf16.msra.mxu1 %v1753_v21 }
 0x4df   :  { %1610 = vmatprep.subr.bf16.mxu1 %v1898_v0 }
 0x4e1   :  { %1587 = vmatmul.mubr.bf16.vlgmr.msra.gmra.mrb[12].mxu1 %v831_v23 }
 0x4e2   :  { %1626 = vmatprep.mubr.msk.bf16.mxu1 %vm1899_vm0, %v1898_v0  ;;  %1611 = vmatpush3.bf16.msra.mxu1 %v1762_v32 }
 0x4e3   :  { %1612 = vmatprep.subr.bf16.mxu1 %v1898_v0 }
 0x4e6   :  { %1613 = vmatpush3.bf16.msra.mxu1 %v1763_v33 }
 0x4e7   :  { %1614 = vmatprep.subr.bf16.mxu1 %v1898_v0 }
 0x4ea   :  { %1615 = vmatpush3.bf16.msra.mxu1 %v1764_v34 }
 0x4eb   :  { %1616 = vmatprep.subr.bf16.mxu1 %v1898_v0 }
 0x4ee   :  { %1617 = vmatpush3.bf16.msra.mxu1 %v1765_v35 }
 0x4ef   :  { %1618 = vmatprep.subr.bf16.mxu1 %v1898_v0 }
 0x4f2   :  { %1619 = vmatpush3.bf16.msra.mxu1 %v1766_v36 }
 0x4f3   :  { %1620 = vmatprep.subr.bf16.mxu1 %v1898_v0 }
 0x4f6   :  { %1621 = vmatpush3.bf16.msra.mxu1 %v1767_v37 }
 0x4f7   :  { %1622 = vmatprep.subr.bf16.mxu1 %v1898_v0 }
 0x4fa   :  { %1623 = vmatpush3.bf16.msra.mxu1 %v1768_v52 }
 0x4fb   :  { %1624 = vmatprep.subr.bf16.mxu1 %v1898_v0 }
 0x4fe   :  { %1625 = vmatpush3.bf16.msra.mxu1 %v1769_v53 }
 0x594   :  { %v939_v39 = vpop.f32.mrb[8].mxu1 }
 0x595   :  { %v940_v40 = vadd.f32 %v1388_v38, %v939_v39  ;;  %v1568_v41 = vpop.f32.mrb[9].mxu1 }
 0x596   :  { %v942_v42 = vpop.f32.mrb[10].mxu1 }
 0x597   :  { %1290 = vst [vmem:[#allocation10 + $0x10] sm:$0xff] %v940_v40  ;;  %v1569_v43 = vpop.f32.mrb[11].mxu1 }
 0x5b4   :  { %v1052_v45 = vpop.f32.mrb[12].mxu1 }
 0x5b5   :  { %v1053_v46 = vadd.f32 %v1398_v44, %v1052_v45  ;;  %v1588_v47 = vpop.f32.mrb[13].mxu1 }
 0x5b6   :  { %v1055_v48 = vpop.f32.mrb[14].mxu1 }
 0x5b7   :  { %v1058_v49 = vmax.f32 %v1053_v46, 0.0  ;;  %v1589_v50 = vpop.f32.mrb[15].mxu1 }
 0x5b9   :  { %v1059_v51 = vpack.c.bf16 %v1058_v49, %v1058_v49 }
 0x5bb   :  { %1607 = vmatmul.mubr.bf16.vlgmr.msra.gmra.mrb[12].mxu0 %v1059_v51 }
 0x68e   :  { %v1167_v55 = vpop.f32.mrb[12].mxu0 }
 0x68f   :  { %v1168_v56 = vadd.f32 %v1408_v54, %v1167_v55  ;;  %v1608_v57 = vpop.f32.mrb[13].mxu0 }
 0x690   :  { %v1170_v58 = vpop.f32.mrb[14].mxu0 }
 0x691   :  { %v1173_v59 = vmax.f32 %v1168_v56, 0.0  ;;  %v1609_v60 = vpop.f32.mrb[15].mxu0 }
 0x693   :  { %v1174_v61 = vpack.c.bf16 %v1173_v59, %v1173_v59 }
 0x695   :  { %1627 = vmatmul.mubr.bf16.vlgmr.msra.gmra.mrb[16].mxu1 %v1174_v61 }
 0x768   :  { %v1282_v0 = vpop.f32.mrb[16].mxu1 }
 0x769   :  { %v1283_v63 = vadd.f32 %v1418_v62, %v1282_v0  ;;  %v1628_v1 = vpop.f32.mrb[17].mxu1 }
 0x76a   :  { %v1285_v2 = vpop.f32.mrb[18].mxu1 }
 0x76b   :  { %1289 = vst [vmem:[#allocation10 + $0x8] sm:$0xff] %v1283_v63  ;;  %v1629_v3 = vpop.f32.mrb[19].mxu1 }
 0x76c   :  { %1871 = shalt.err (!%p1868_p8)
}
 0x76d   :  { %s1872_s2 = scalar_lea.hbm %s2106_s7, 640 }
 0x76e   :  { %p1873_p9 = scmp.ne.s32.totalorder %s2106_s7, %s1872_s2  ;;  %p1876_p10 = scmp.lt.u32.totalorder %s1872_s2, %s2106_s7 }
 0x770   :  { %p1878_p11 = pnand %p1876_p10, %p1873_p9 }
 0x772   :  { %1881 = shalt.err (!%p1878_p11)
}
 0x773   :  { %1302 = dma.vmem_to_hbm [thread:$0]  %s1300_s19, 640, %s2106_s7, [#allocation4]  }
 0x774   :  { %1888 = dma.done.wait [#allocation4], 640  }
 0x775   :  { %1889 = vsyncadd [#allocation4], 4294966656 }
 0x776   :  { %1306 = vsyncpa [#allocation3], 1 }
 0x777   :  { %1307 = vsyncpa [#allocation6], 1 }
 0x778   :  { %1308 = vsyncpa [#allocation9], 1 }
 0x779   :  { %1309 = vsyncpa [#allocation4], 1 }

</bundles_post_ra>
